<compile_context>
chip_gen: v7x
topology: tpu7x:2x2x1
jax: 0.10.0
libtpu: 0.0.40
codegen_flags: <defaults>
</compile_context>

<pallas_src>
import functools

import jax
import jax.numpy as jnp
from jax.experimental import pallas as pl
from jax.experimental.pallas import tpu as pltpu

_CLS_PAD = 32   # padded logit width  (num_classes <= 32)
_RIS_PAD = 32   # padded RIS phase width (n_ris <= 32)


# ---------------------------------------------------------------------------
# Kernel: one grid step == one RecurrentAttention.forward step.
# ---------------------------------------------------------------------------
def _fused_ram_kernel(
    # per-step input
    x_ref,                                  # (1, Bp, meas_dim)        f32
    # initial state (constant blocks, consumed at t == 0)
    h0_ref, c0_ref, ph0_ref,                # (Bp,H) (Bp,H) (Bp,32)    f32
    # VMEM-resident fused weights (bf16) and biases (f32)
    w1_ref, b1_ref,                         # (meas+32, E1), (1, E1)
    w2_ref, b2_ref,                         # (E1, G),       (1, G)
    wl_ref, bl_ref,                         # (G+H, 4H),     (1, 4H)
    wh1_ref, bh1_ref,                       # (H, Z),        (1, Z)
    wh2_ref, bh2_ref,                       # (Z, 64),       (1, 64)
    # packed per-step output
    out_ref,                                # (1, Bp, 2H+64)           f32
    # carried state (VMEM scratch)
    h_scr, c_scr, ph_scr,
    *, rnn_hidden, cls_pad):
  f32 = jnp.float32
  bf16 = jnp.bfloat16
  H = rnn_hidden

  @pl.when(pl.program_id(0) == 0)
  def _():
    h_scr[...] = h0_ref[...]
    c_scr[...] = c0_ref[...]
    ph_scr[...] = ph0_ref[...]

  def mm(a, w_ref, b_ref):
    # bf16 MXU matmul with f32 accumulation + f32 bias.
    return jnp.dot(a.astype(bf16), w_ref[...],
                   preferred_element_type=f32) + b_ref[...]

  x = x_ref[0]                              # (Bp, meas_dim)
  h_prev = h_scr[...]
  c_prev = c_scr[...]
  ph_prev = ph_scr[...]                     # (Bp, 32), pads are 0

  # ---- MeasureEmbeddingNetwork (fused: block-diag embed, stacked m2g/p2g) ----
  xp = jnp.concatenate([x, ph_prev], axis=-1)          # (Bp, meas+32)
  mp = jax.nn.relu(mm(xp, w1_ref, b1_ref))             # (Bp, E1) = [m | p]
  g = jax.nn.relu(mm(mp, w2_ref, b2_ref))              # (Bp, G)

  # ---- LSTMCell: one fused (Bp, G+H) @ (G+H, 4H) matmul, gate order i,f,g,o --
  gates = mm(jnp.concatenate([g, h_prev], axis=-1), wl_ref, bl_ref)
  # NOTE: the 32-lane gate slices cost a few XLU lane rotates, but one N=4H
  # matmul beats four N=H matmuls on this MXU-latency-bound chain.
  i_g = jax.nn.sigmoid(gates[:, 0 * H:1 * H])
  f_g = jax.nn.sigmoid(gates[:, 1 * H:2 * H])
  g_g = jnp.tanh(gates[:, 2 * H:3 * H])
  o_g = jax.nn.sigmoid(gates[:, 3 * H:4 * H])
  c_t = f_g * c_prev + i_g * g_g
  h_t = o_g * jnp.tanh(c_t)

  # ---- Classify + RIS-phase heads (fused: [c1|r1] then block-diag c2/r2) ----
  zr = jax.nn.relu(mm(h_t, wh1_ref, bh1_ref))          # (Bp, Z) = [z | r]
  head = mm(zr, wh2_ref, bh2_ref)                      # (Bp, 64)
  logits = head[:, :cls_pad]                           # pad lanes biased -1e9
  mx = jnp.max(logits, axis=-1, keepdims=True)
  lse = mx + jnp.log(jnp.sum(jnp.exp(logits - mx), axis=-1, keepdims=True))
  log_prob = logits - lse                              # (Bp, 32)
  phase_next = jnp.tanh(head[:, cls_pad:])             # (Bp, 32), pads -> 0

  # carry state to next timestep
  h_scr[...] = h_t
  c_scr[...] = c_t
  ph_scr[...] = phase_next

  # single lane-dense 128-wide store per step: [h | c | log_prob | phase]
  out_ref[0] = jnp.concatenate([h_t, c_t, log_prob, phase_next], axis=-1)


# ---------------------------------------------------------------------------
# Parameters (PyTorch-equivalent [in, out] layout) and host-side fusion.
# ---------------------------------------------------------------------------
def init_params(key, *, meas_dim, n_ris, meas_hidden, phase_hidden,
                glimpse_dim, rnn_hidden, classify_hidden, num_classes,
                ris_hidden):
  """Deterministic synthetic parameters (weights [in, out], biases [1, out])."""
  def lin(k, fan_in, fan_out):
    kw, kb = jax.random.split(k)
    w = jax.random.normal(kw, (fan_in, fan_out), jnp.float32) * 0.1
    b = jax.random.normal(kb, (1, fan_out), jnp.float32) * 0.01
    return w, b

  ks = jax.random.split(key, 10)
  p = {}
  p['w_meas'], p['b_meas'] = lin(ks[0], meas_dim, meas_hidden)
  p['w_ph'],   p['b_ph']   = lin(ks[1], n_ris, phase_hidden)
  p['w_m2g'],  p['b_m2g']  = lin(ks[2], meas_hidden, glimpse_dim)
  p['w_p2g'],  p['b_p2g']  = lin(ks[3], phase_hidden, glimpse_dim)
  p['w_ih'],   p['b_ih']   = lin(ks[4], glimpse_dim, 4 * rnn_hidden)
  p['w_hh'],   p['b_hh']   = lin(ks[5], rnn_hidden, 4 * rnn_hidden)
  p['w_c1'],   p['b_c1']   = lin(ks[6], rnn_hidden, classify_hidden)
  p['w_c2'],   p['b_c2']   = lin(ks[7], classify_hidden, num_classes)
  p['w_r1'],   p['b_r1']   = lin(ks[8], rnn_hidden, ris_hidden)
  p['w_r2'],   p['b_r2']   = lin(ks[9], ris_hidden, n_ris)
  return p


def build_fused_params(p, *, meas_dim, n_ris, meas_hidden, phase_hidden,
                       glimpse_dim, rnn_hidden, classify_hidden, num_classes,
                       ris_hidden, transmit_scale):
  """Fuse per-layer weights into the 5 matmuls used by the kernel."""
  f32, bf16 = jnp.float32, jnp.bfloat16
  assert n_ris <= _RIS_PAD and num_classes <= _CLS_PAD
  assert p['w_m2g'].shape == (meas_hidden, glimpse_dim)

  # 1) block-diag([w_meas * transmit_scale, w_ph]); phase input padded to 32.
  e1 = meas_hidden + phase_hidden
  w1 = jnp.zeros((meas_dim + _RIS_PAD, e1), f32)
  w1 = w1.at[:meas_dim, :meas_hidden].set(p['w_meas'] * transmit_scale)
  w1 = w1.at[meas_dim:meas_dim + n_ris, meas_hidden:].set(p['w_ph'])
  b1 = jnp.concatenate([p['b_meas'], p['b_ph']], axis=-1)

  # 2) stacked [w_m2g; w_p2g] (the two summed linears become one dot).
  w2 = jnp.concatenate([p['w_m2g'], p['w_p2g']], axis=0)
  b2 = p['b_m2g'] + p['b_p2g']

  # 3) LSTM: stacked [w_ih; w_hh], single combined bias.
  wl = jnp.concatenate([p['w_ih'], p['w_hh']], axis=0)
  bl = p['b_ih'] + p['b_hh']

  # 4) heads layer 1: [w_c1 | w_r1].
  wh1 = jnp.concatenate([p['w_c1'], p['w_r1']], axis=1)
  bh1 = jnp.concatenate([p['b_c1'], p['b_r1']], axis=-1)

  # 5) heads layer 2: block-diag(w_c2 -> 32 cols, w_r2 -> 32 cols).
  wh2 = jnp.zeros((classify_hidden + ris_hidden, _CLS_PAD + _RIS_PAD), f32)
  wh2 = wh2.at[:classify_hidden, :num_classes].set(p['w_c2'])
  wh2 = wh2.at[classify_hidden:, _CLS_PAD:_CLS_PAD + n_ris].set(p['w_r2'])
  bh2 = jnp.zeros((1, _CLS_PAD + _RIS_PAD), f32)
  bh2 = bh2.at[:, :num_classes].set(p['b_c2'])
  bh2 = bh2.at[:, num_classes:_CLS_PAD].set(-1e9)      # dead logit lanes
  bh2 = bh2.at[:, _CLS_PAD:_CLS_PAD + n_ris].set(p['b_r2'])

  cast = lambda w: w.astype(bf16)
  return dict(w1=cast(w1), b1=b1, w2=cast(w2), b2=b2, wl=cast(wl), bl=bl,
              wh1=cast(wh1), bh1=bh1, wh2=cast(wh2), bh2=bh2,
              dims=dict(meas_dim=meas_dim, n_ris=n_ris, rnn_hidden=rnn_hidden,
                        num_classes=num_classes))


# ---------------------------------------------------------------------------
# Wrappers
# ---------------------------------------------------------------------------
def recurrent_attention_rollout(fused, x_seq, ris_phase_power_0, state_0):
  """T chained RecurrentAttention.forward steps in one pallas_call.

  x_seq:             (T, B, meas_dim)  measurement at each step
  ris_phase_power_0: (B, n_ris)        RIS_phase_power_t_prev for step 0
  state_0:           (h0, c0), each (B, rnn_hidden)
  Returns (h_seq, c_seq, phase_seq, log_prob_seq), each with leading (T, B).
  """
  d = fused['dims']
  H, n_ris, num_classes, meas_dim = (d['rnn_hidden'], d['n_ris'],
                                     d['num_classes'], d['meas_dim'])
  T, B, _ = x_seq.shape
  Bp = max(8, ((B + 7) // 8) * 8)            # sublane-aligned batch
  out_w = 2 * H + _CLS_PAD + _RIS_PAD        # 128 lanes for these sizes

  h0, c0 = state_0
  xs = jnp.pad(x_seq.astype(jnp.float32), ((0, 0), (0, Bp - B), (0, 0)))
  h0p = jnp.pad(h0.astype(jnp.float32), ((0, Bp - B), (0, 0)))
  c0p = jnp.pad(c0.astype(jnp.float32), ((0, Bp - B), (0, 0)))
  ph0p = jnp.pad(ris_phase_power_0.astype(jnp.float32),
                 ((0, Bp - B), (0, _RIS_PAD - n_ris)))

  weight_names = ['w1', 'b1', 'w2', 'b2', 'wl', 'bl', 'wh1', 'bh1', 'wh2', 'bh2']
  weights = [fused[k] for k in weight_names]

  def const(shape):   # VMEM-resident block: constant index_map, fetched once
    return pl.BlockSpec(shape, lambda t: (0,) * len(shape))

  kernel = functools.partial(_fused_ram_kernel, rnn_hidden=H, cls_pad=_CLS_PAD)

  out = pl.pallas_call(
      kernel,
      out_shape=jax.ShapeDtypeStruct((T, Bp, out_w), jnp.float32),
      grid=(T,),
      in_specs=[pl.BlockSpec((1, Bp, meas_dim), lambda t: (t, 0, 0)),
                const((Bp, H)), const((Bp, H)), const((Bp, _RIS_PAD))]
               + [const(w.shape) for w in weights],
      out_specs=pl.BlockSpec((1, Bp, out_w), lambda t: (t, 0, 0)),
      scratch_shapes=[pltpu.VMEM((Bp, H), jnp.float32),
                      pltpu.VMEM((Bp, H), jnp.float32),
                      pltpu.VMEM((Bp, _RIS_PAD), jnp.float32)],
      compiler_params=pltpu.CompilerParams(
          dimension_semantics=("arbitrary",)),
  )(xs, h0p, c0p, ph0p, *weights)

  h_seq = out[:, :B, :H]
  c_seq = out[:, :B, H:2 * H]
  log_prob_seq = out[:, :B, 2 * H:2 * H + num_classes]
  phase_seq = out[:, :B, 2 * H + _CLS_PAD:2 * H + _CLS_PAD + n_ris]
  return h_seq, c_seq, phase_seq, log_prob_seq


def recurrent_attention_forward(fused, x, ris_phase_power_t_prev, state_t_prev):
  """Exactly one RecurrentAttention.forward step (a T=1 rollout).

  x: (B, 1, meas_dim); ris_phase_power_t_prev: (B, 1, n_ris);
  state_t_prev: (h, c), each (B, rnn_hidden).
  Returns ((h, c), RIS_phase_power_next (B, 1, n_ris), log_prob (B, classes)).
  """
  x_seq = jnp.transpose(x, (1, 0, 2))                       # (1, B, meas_dim)
  phase0 = jnp.squeeze(ris_phase_power_t_prev, axis=1)      # (B, n_ris)
  h_seq, c_seq, phase_seq, log_prob_seq = recurrent_attention_rollout(
      fused, x_seq, phase0, state_t_prev)
  return ((h_seq[0], c_seq[0]), phase_seq[0][:, None, :], log_prob_seq[0])


def reference_rollout(fused, x_seq, ris_phase_power_0, state_0):
  """Pure-JAX reference with the same fused bf16 weights / f32 accumulation."""
  d = fused['dims']
  H, num_classes, n_ris = d['rnn_hidden'], d['num_classes'], d['n_ris']
  f32, bf16 = jnp.float32, jnp.bfloat16

  def mm(a, w, b):
    return jnp.dot(a.astype(bf16), w, preferred_element_type=f32) + b

  def step(carry, x):
    h, c, ph = carry
    mp = jax.nn.relu(mm(jnp.concatenate([x, ph], -1), fused['w1'], fused['b1']))
    g = jax.nn.relu(mm(mp, fused['w2'], fused['b2']))
    gates = mm(jnp.concatenate([g, h], -1), fused['wl'], fused['bl'])
    i_g = jax.nn.sigmoid(gates[:, 0 * H:1 * H])
    f_g = jax.nn.sigmoid(gates[:, 1 * H:2 * H])
    g_g = jnp.tanh(gates[:, 2 * H:3 * H])
    o_g = jax.nn.sigmoid(gates[:, 3 * H:4 * H])
    c_t = f_g * c + i_g * g_g
    h_t = o_g * jnp.tanh(c_t)
    zr = jax.nn.relu(mm(h_t, fused['wh1'], fused['bh1']))
    head = mm(zr, fused['wh2'], fused['bh2'])
    log_prob = jax.nn.log_softmax(head[:, :_CLS_PAD], axis=-1)
    phase_next = jnp.tanh(head[:, _CLS_PAD:])
    return (h_t, c_t, phase_next), (h_t, c_t, log_prob[:, :num_classes],
                                    phase_next[:, :n_ris])

  h0, c0 = state_0
  ph0 = jnp.pad(ris_phase_power_0.astype(f32), ((0, 0), (0, _RIS_PAD - n_ris)))
  _, ys = jax.lax.scan(step, (h0.astype(f32), c0.astype(f32), ph0),
                       x_seq.astype(f32))
  return ys


if __name__ == "__main__":
  B = 4
  T = 8
  meas_dim = 16                                # per-glimpse measurement dim
  measure_embedding_hidden_size = [32]
  RIS_phase_power_embedding_hidden_size = [32, 64]   # [-1] = LSTM input size
  RIS_phase_customization_hidden_size = [32]
  classify_hidden_size = [32]
  rnn_hidden_size = 32
  num_classes = 10
  n_ris = 8                                    # used_channel[0].shape[1]
  transmit_scale = 1.0
  learned_start = 0.0                          # seeds the initial RIS phase power

  key = jax.random.PRNGKey(0)
  k_param, k_x = jax.random.split(key)

  params = init_params(
      k_param, meas_dim=meas_dim, n_ris=n_ris,
      meas_hidden=measure_embedding_hidden_size[0],
      phase_hidden=RIS_phase_power_embedding_hidden_size[0],
      glimpse_dim=RIS_phase_power_embedding_hidden_size[-1],
      rnn_hidden=rnn_hidden_size, classify_hidden=classify_hidden_size[0],
      num_classes=num_classes,
      ris_hidden=RIS_phase_customization_hidden_size[0])

  fused = build_fused_params(
      params, meas_dim=meas_dim, n_ris=n_ris,
      meas_hidden=measure_embedding_hidden_size[0],
      phase_hidden=RIS_phase_power_embedding_hidden_size[0],
      glimpse_dim=RIS_phase_power_embedding_hidden_size[-1],
      rnn_hidden=rnn_hidden_size, classify_hidden=classify_hidden_size[0],
      num_classes=num_classes,
      ris_hidden=RIS_phase_customization_hidden_size[0],
      transmit_scale=transmit_scale)

  x_seq = jax.random.normal(k_x, (T, B, meas_dim), jnp.float32)
  phase0 = jnp.full((B, n_ris), learned_start, jnp.float32)
  state0 = (jnp.zeros((B, rnn_hidden_size), jnp.float32),
            jnp.zeros((B, rnn_hidden_size), jnp.float32))

  # Fused T-step rollout: one pallas_call, weights VMEM-resident, h/c/phase
  # carried in scratch across the grid.
  h_seq, c_seq, phase_seq, log_prob_seq = jax.block_until_ready(
      recurrent_attention_rollout(fused, x_seq, phase0, state0))

  assert h_seq.shape == (T, B, rnn_hidden_size)
  assert c_seq.shape == (T, B, rnn_hidden_size)
  assert phase_seq.shape == (T, B, n_ris)
  assert log_prob_seq.shape == (T, B, num_classes)
  # log_softmax sanity: rows sum to ~1 in prob space at every step.
  assert bool(jnp.all(jnp.abs(jnp.sum(jnp.exp(log_prob_seq), -1) - 1.0) < 1e-4))

  # Pure-JAX reference check (same fused bf16 weights, f32 accumulation).
  rh, rc, rlp, rph = reference_rollout(fused, x_seq, phase0, state0)
  assert bool(jnp.max(jnp.abs(h_seq - rh)) < 1e-2)
  assert bool(jnp.max(jnp.abs(c_seq - rc)) < 1e-2)
  assert bool(jnp.max(jnp.abs(log_prob_seq - rlp)) < 1e-2)
  assert bool(jnp.max(jnp.abs(phase_seq - rph)) < 1e-2)

  # Single-step API matching RecurrentAttention.forward exactly.
  x0 = x_seq[0][:, None, :]                        # (B, 1, meas_dim)
  ris_phase_prev = phase0[:, None, :]              # (B, 1, n_ris)
  (h1, c1), ris_phase_next, log_prob1 = recurrent_attention_forward(
      fused, x0, ris_phase_prev, state0)
  jax.block_until_ready((h1, c1, ris_phase_next, log_prob1))
  assert h1.shape == (B, rnn_hidden_size)
  assert c1.shape == (B, rnn_hidden_size)
  assert ris_phase_next.shape == (B, 1, n_ris)
  assert log_prob1.shape == (B, num_classes)
  assert bool(jnp.max(jnp.abs(h1 - h_seq[0])) < 1e-4)
  assert bool(jnp.max(jnp.abs(log_prob1 - log_prob_seq[0])) < 1e-4)

  print("KERNEL_OK")
</pallas_src>

<mosaic_0001>
module attributes {stable_mosaic.version = 11 : i64} {
  func.func @_fused_ram_kernel(%arg0: i32, %arg1: memref<1x8x16xf32, #tpu.memory_space<vmem>>, %arg2: memref<8x32xf32, #tpu.memory_space<vmem>>, %arg3: memref<8x32xf32, #tpu.memory_space<vmem>>, %arg4: memref<8x32xf32, #tpu.memory_space<vmem>>, %arg5: memref<48x64xbf16, #tpu.memory_space<vmem>>, %arg6: memref<1x64xf32, #tpu.memory_space<vmem>>, %arg7: memref<64x64xbf16, #tpu.memory_space<vmem>>, %arg8: memref<1x64xf32, #tpu.memory_space<vmem>>, %arg9: memref<96x128xbf16, #tpu.memory_space<vmem>>, %arg10: memref<1x128xf32, #tpu.memory_space<vmem>>, %arg11: memref<32x64xbf16, #tpu.memory_space<vmem>>, %arg12: memref<1x64xf32, #tpu.memory_space<vmem>>, %arg13: memref<64x64xbf16, #tpu.memory_space<vmem>>, %arg14: memref<1x64xf32, #tpu.memory_space<vmem>>, %arg15: memref<1x8x128xf32, #tpu.memory_space<vmem>>, %arg16: memref<8x32xf32, #tpu.memory_space<vmem>>, %arg17: memref<8x32xf32, #tpu.memory_space<vmem>>, %arg18: memref<8x32xf32, #tpu.memory_space<vmem>>) attributes {dimension_semantics = [#tpu.dimension_semantics<arbitrary>], iteration_bounds = array<i64: 8>, scalar_prefetch = 0 : i64, scratch_operands = 3 : i64, tpu.core_type = #tpu.core_type<tc>, window_params = [{transform_indices = @transform_0, window_bounds = array<i64: 1, 8, 16>}, {pipeline_mode = #tpu.pipeline_mode<synchronous>, transform_indices = @transform_1, window_bounds = array<i64: 8, 32>}, {pipeline_mode = #tpu.pipeline_mode<synchronous>, transform_indices = @transform_2, window_bounds = array<i64: 8, 32>}, {pipeline_mode = #tpu.pipeline_mode<synchronous>, transform_indices = @transform_3, window_bounds = array<i64: 8, 32>}, {pipeline_mode = #tpu.pipeline_mode<synchronous>, transform_indices = @transform_4, window_bounds = array<i64: 48, 64>}, {pipeline_mode = #tpu.pipeline_mode<synchronous>, transform_indices = @transform_5, window_bounds = array<i64: 1, 64>}, {pipeline_mode = #tpu.pipeline_mode<synchronous>, transform_indices = @transform_6, window_bounds = array<i64: 64, 64>}, {pipeline_mode = #tpu.pipeline_mode<synchronous>, transform_indices = @transform_7, window_bounds = array<i64: 1, 64>}, {pipeline_mode = #tpu.pipeline_mode<synchronous>, transform_indices = @transform_8, window_bounds = array<i64: 96, 128>}, {pipeline_mode = #tpu.pipeline_mode<synchronous>, transform_indices = @transform_9, window_bounds = array<i64: 1, 128>}, {pipeline_mode = #tpu.pipeline_mode<synchronous>, transform_indices = @transform_10, window_bounds = array<i64: 32, 64>}, {pipeline_mode = #tpu.pipeline_mode<synchronous>, transform_indices = @transform_11, window_bounds = array<i64: 1, 64>}, {pipeline_mode = #tpu.pipeline_mode<synchronous>, transform_indices = @transform_12, window_bounds = array<i64: 64, 64>}, {pipeline_mode = #tpu.pipeline_mode<synchronous>, transform_indices = @transform_13, window_bounds = array<i64: 1, 64>}, {transform_indices = @transform_14, window_bounds = array<i64: 1, 8, 128>}]} {
    %c0_i32 = arith.constant 0 : i32
    %0 = arith.cmpi eq, %arg0, %c0_i32 : i32
    %1 = arith.extui %0 : i1 to i32
    %c0_i32_0 = arith.constant 0 : i32
    %2 = arith.cmpi ne, %1, %c0_i32_0 : i32
    scf.if %2 {
      %c0_50 = arith.constant 0 : index
      %c0_51 = arith.constant 0 : index
      %92 = vector.load %arg2[%c0_50, %c0_51] : memref<8x32xf32, #tpu.memory_space<vmem>>, vector<8x32xf32>
      %c0_52 = arith.constant 0 : index
      %c0_53 = arith.constant 0 : index
      %93 = vector.load %arg16[%c0_52, %c0_53] : memref<8x32xf32, #tpu.memory_space<vmem>>, vector<8x32xf32>
      tpu.vector_store %arg16[%c0_52, %c0_53], %92 {strides = array<i32>} : memref<8x32xf32, #tpu.memory_space<vmem>>, vector<8x32xf32>,
      %c0_54 = arith.constant 0 : index
      %c0_55 = arith.constant 0 : index
      %94 = vector.load %arg3[%c0_54, %c0_55] : memref<8x32xf32, #tpu.memory_space<vmem>>, vector<8x32xf32>
      %c0_56 = arith.constant 0 : index
      %c0_57 = arith.constant 0 : index
      %95 = vector.load %arg17[%c0_56, %c0_57] : memref<8x32xf32, #tpu.memory_space<vmem>>, vector<8x32xf32>
      tpu.vector_store %arg17[%c0_56, %c0_57], %94 {strides = array<i32>} : memref<8x32xf32, #tpu.memory_space<vmem>>, vector<8x32xf32>,
      %c0_58 = arith.constant 0 : index
      %c0_59 = arith.constant 0 : index
      %96 = vector.load %arg4[%c0_58, %c0_59] : memref<8x32xf32, #tpu.memory_space<vmem>>, vector<8x32xf32>
      %c0_60 = arith.constant 0 : index
      %c0_61 = arith.constant 0 : index
      %97 = vector.load %arg18[%c0_60, %c0_61] : memref<8x32xf32, #tpu.memory_space<vmem>>, vector<8x32xf32>
      tpu.vector_store %arg18[%c0_60, %c0_61], %96 {strides = array<i32>} : memref<8x32xf32, #tpu.memory_space<vmem>>, vector<8x32xf32>,
    } else {
    }
    %c0 = arith.constant 0 : index
    %c0_1 = arith.constant 0 : index
    %c0_2 = arith.constant 0 : index
    %3 = vector.load %arg1[%c0, %c0_1, %c0_2] : memref<1x8x16xf32, #tpu.memory_space<vmem>>, vector<1x8x16xf32>
    %4 = vector.shape_cast %3 : vector<1x8x16xf32> to vector<8x16xf32>
    %c0_3 = arith.constant 0 : index
    %c0_4 = arith.constant 0 : index
    %5 = vector.load %arg16[%c0_3, %c0_4] : memref<8x32xf32, #tpu.memory_space<vmem>>, vector<8x32xf32>
    %c0_5 = arith.constant 0 : index
    %c0_6 = arith.constant 0 : index
    %6 = vector.load %arg17[%c0_5, %c0_6] : memref<8x32xf32, #tpu.memory_space<vmem>>, vector<8x32xf32>
    %c0_7 = arith.constant 0 : index
    %c0_8 = arith.constant 0 : index
    %7 = vector.load %arg18[%c0_7, %c0_8] : memref<8x32xf32, #tpu.memory_space<vmem>>, vector<8x32xf32>
    %8 = tpu.concatenate %4, %7 in 1 : vector<8x16xf32>, vector<8x32xf32> -> vector<8x48xf32>
    %9 = arith.truncf %8 : vector<8x48xf32> to vector<8x48xbf16>
    %c0_9 = arith.constant 0 : index
    %c0_10 = arith.constant 0 : index
    %10 = vector.load %arg5[%c0_9, %c0_10] : memref<48x64xbf16, #tpu.memory_space<vmem>>, vector<48x64xbf16>
    %cst = arith.constant dense<0.000000e+00> : vector<8x64xf32>
    %11 = tpu.matmul %9, %10, %cst {dimension_numbers = #tpu.dot_dimension_numbers<[1], [0], [0], [1], [0, 0, 1, 1], [], []>} : vector<8x48xbf16>, vector<48x64xbf16>, vector<8x64xf32> -> vector<8x64xf32>
    %c0_11 = arith.constant 0 : index
    %c0_12 = arith.constant 0 : index
    %12 = vector.load %arg6[%c0_11, %c0_12] : memref<1x64xf32, #tpu.memory_space<vmem>>, vector<1x64xf32>
    %13 = vector.broadcast %12 : vector<1x64xf32> to vector<8x64xf32>
    %14 = arith.addf %11, %13 : vector<8x64xf32>
    %cst_13 = arith.constant 0.000000e+00 : f32
    %15 = vector.broadcast %cst_13 : f32 to vector<8x64xf32>
    %16 = arith.maximumf %14, %15 : vector<8x64xf32>
    %17 = arith.truncf %16 : vector<8x64xf32> to vector<8x64xbf16>
    %c0_14 = arith.constant 0 : index
    %c0_15 = arith.constant 0 : index
    %18 = vector.load %arg7[%c0_14, %c0_15] : memref<64x64xbf16, #tpu.memory_space<vmem>>, vector<64x64xbf16>
    %cst_16 = arith.constant dense<0.000000e+00> : vector<8x64xf32>
    %19 = tpu.matmul %17, %18, %cst_16 {dimension_numbers = #tpu.dot_dimension_numbers<[1], [0], [0], [1], [0, 0, 1, 1], [], []>} : vector<8x64xbf16>, vector<64x64xbf16>, vector<8x64xf32> -> vector<8x64xf32>
    %c0_17 = arith.constant 0 : index
    %c0_18 = arith.constant 0 : index
    %20 = vector.load %arg8[%c0_17, %c0_18] : memref<1x64xf32, #tpu.memory_space<vmem>>, vector<1x64xf32>
    %21 = vector.broadcast %20 : vector<1x64xf32> to vector<8x64xf32>
    %22 = arith.addf %19, %21 : vector<8x64xf32>
    %cst_19 = arith.constant 0.000000e+00 : f32
    %23 = vector.broadcast %cst_19 : f32 to vector<8x64xf32>
    %24 = arith.maximumf %22, %23 : vector<8x64xf32>
    %25 = tpu.concatenate %24, %5 in 1 : vector<8x64xf32>, vector<8x32xf32> -> vector<8x96xf32>
    %26 = arith.truncf %25 : vector<8x96xf32> to vector<8x96xbf16>
    %c0_20 = arith.constant 0 : index
    %c0_21 = arith.constant 0 : index
    %27 = vector.load %arg9[%c0_20, %c0_21] : memref<96x128xbf16, #tpu.memory_space<vmem>>, vector<96x128xbf16>
    %cst_22 = arith.constant dense<0.000000e+00> : vector<8x128xf32>
    %28 = tpu.matmul %26, %27, %cst_22 {dimension_numbers = #tpu.dot_dimension_numbers<[1], [0], [0], [1], [0, 0, 1, 1], [], []>} : vector<8x96xbf16>, vector<96x128xbf16>, vector<8x128xf32> -> vector<8x128xf32>
    %c0_23 = arith.constant 0 : index
    %c0_24 = arith.constant 0 : index
    %29 = vector.load %arg10[%c0_23, %c0_24] : memref<1x128xf32, #tpu.memory_space<vmem>>, vector<1x128xf32>
    %30 = vector.broadcast %29 : vector<1x128xf32> to vector<8x128xf32>
    %31 = arith.addf %28, %30 : vector<8x128xf32>
    %32 = vector.extract_strided_slice %31 {offsets = [0, 0], sizes = [8, 32], strides = [1, 1]} : vector<8x128xf32> to vector<8x32xf32>
    %33 = arith.negf %32 : vector<8x32xf32>
    %34 = math.exp %33 : vector<8x32xf32>
    %cst_25 = arith.constant 1.000000e+00 : f32
    %35 = vector.broadcast %cst_25 : f32 to vector<8x32xf32>
    %36 = arith.addf %35, %34 : vector<8x32xf32>
    %37 = arith.divf %35, %36 : vector<8x32xf32>
    %38 = vector.extract_strided_slice %31 {offsets = [0, 32], sizes = [8, 32], strides = [1, 1]} : vector<8x128xf32> to vector<8x32xf32>
    %39 = arith.negf %38 : vector<8x32xf32>
    %40 = math.exp %39 : vector<8x32xf32>
    %cst_26 = arith.constant 1.000000e+00 : f32
    %41 = vector.broadcast %cst_26 : f32 to vector<8x32xf32>
    %42 = arith.addf %41, %40 : vector<8x32xf32>
    %43 = arith.divf %41, %42 : vector<8x32xf32>
    %44 = vector.extract_strided_slice %31 {offsets = [0, 64], sizes = [8, 32], strides = [1, 1]} : vector<8x128xf32> to vector<8x32xf32>
    %45 = math.tanh %44 : vector<8x32xf32>
    %46 = vector.extract_strided_slice %31 {offsets = [0, 96], sizes = [8, 32], strides = [1, 1]} : vector<8x128xf32> to vector<8x32xf32>
    %47 = arith.negf %46 : vector<8x32xf32>
    %48 = math.exp %47 : vector<8x32xf32>
    %cst_27 = arith.constant 1.000000e+00 : f32
    %49 = vector.broadcast %cst_27 : f32 to vector<8x32xf32>
    %50 = arith.addf %49, %48 : vector<8x32xf32>
    %51 = arith.divf %49, %50 : vector<8x32xf32>
    %52 = arith.mulf %43, %6 : vector<8x32xf32>
    %53 = arith.mulf %37, %45 : vector<8x32xf32>
    %54 = arith.addf %52, %53 : vector<8x32xf32>
    %55 = math.tanh %54 : vector<8x32xf32>
    %56 = arith.mulf %51, %55 : vector<8x32xf32>
    %57 = arith.truncf %56 : vector<8x32xf32> to vector<8x32xbf16>
    %c0_28 = arith.constant 0 : index
    %c0_29 = arith.constant 0 : index
    %58 = vector.load %arg11[%c0_28, %c0_29] : memref<32x64xbf16, #tpu.memory_space<vmem>>, vector<32x64xbf16>
    %cst_30 = arith.constant dense<0.000000e+00> : vector<8x64xf32>
    %59 = tpu.matmul %57, %58, %cst_30 {dimension_numbers = #tpu.dot_dimension_numbers<[1], [0], [0], [1], [0, 0, 1, 1], [], []>} : vector<8x32xbf16>, vector<32x64xbf16>, vector<8x64xf32> -> vector<8x64xf32>
    %c0_31 = arith.constant 0 : index
    %c0_32 = arith.constant 0 : index
    %60 = vector.load %arg12[%c0_31, %c0_32] : memref<1x64xf32, #tpu.memory_space<vmem>>, vector<1x64xf32>
    %61 = vector.broadcast %60 : vector<1x64xf32> to vector<8x64xf32>
    %62 = arith.addf %59, %61 : vector<8x64xf32>
    %cst_33 = arith.constant 0.000000e+00 : f32
    %63 = vector.broadcast %cst_33 : f32 to vector<8x64xf32>
    %64 = arith.maximumf %62, %63 : vector<8x64xf32>
    %65 = arith.truncf %64 : vector<8x64xf32> to vector<8x64xbf16>
    %c0_34 = arith.constant 0 : index
    %c0_35 = arith.constant 0 : index
    %66 = vector.load %arg13[%c0_34, %c0_35] : memref<64x64xbf16, #tpu.memory_space<vmem>>, vector<64x64xbf16>
    %cst_36 = arith.constant dense<0.000000e+00> : vector<8x64xf32>
    %67 = tpu.matmul %65, %66, %cst_36 {dimension_numbers = #tpu.dot_dimension_numbers<[1], [0], [0], [1], [0, 0, 1, 1], [], []>} : vector<8x64xbf16>, vector<64x64xbf16>, vector<8x64xf32> -> vector<8x64xf32>
    %c0_37 = arith.constant 0 : index
    %c0_38 = arith.constant 0 : index
    %68 = vector.load %arg14[%c0_37, %c0_38] : memref<1x64xf32, #tpu.memory_space<vmem>>, vector<1x64xf32>
    %69 = vector.broadcast %68 : vector<1x64xf32> to vector<8x64xf32>
    %70 = arith.addf %67, %69 : vector<8x64xf32>
    %71 = vector.extract_strided_slice %70 {offsets = [0, 0], sizes = [8, 32], strides = [1, 1]} : vector<8x64xf32> to vector<8x32xf32>
    %cst_39 = arith.constant dense<0xFF800000> : vector<8xf32>
    %72 = vector.multi_reduction <maximumf>, %71, %cst_39 [1] : vector<8x32xf32> to vector<8xf32>
    %73 = vector.shape_cast %72 : vector<8xf32> to vector<8x1xf32>
    %74 = vector.broadcast %73 : vector<8x1xf32> to vector<8x32xf32>
    %75 = arith.subf %71, %74 : vector<8x32xf32>
    %76 = math.exp %75 : vector<8x32xf32>
    %cst_40 = arith.constant dense<0.000000e+00> : vector<8xf32>
    %77 = vector.multi_reduction <add>, %76, %cst_40 [1] : vector<8x32xf32> to vector<8xf32>
    %78 = vector.shape_cast %77 : vector<8xf32> to vector<8x1xf32>
    %79 = math.log %78 : vector<8x1xf32>
    %80 = arith.addf %73, %79 : vector<8x1xf32>
    %81 = vector.broadcast %80 : vector<8x1xf32> to vector<8x32xf32>
    %82 = arith.subf %71, %81 : vector<8x32xf32>
    %83 = vector.extract_strided_slice %70 {offsets = [0, 32], sizes = [8, 32], strides = [1, 1]} : vector<8x64xf32> to vector<8x32xf32>
    %84 = math.tanh %83 : vector<8x32xf32>
    %c0_41 = arith.constant 0 : index
    %c0_42 = arith.constant 0 : index
    %85 = vector.load %arg16[%c0_41, %c0_42] : memref<8x32xf32, #tpu.memory_space<vmem>>, vector<8x32xf32>
    tpu.vector_store %arg16[%c0_41, %c0_42], %56 {strides = array<i32>} : memref<8x32xf32, #tpu.memory_space<vmem>>, vector<8x32xf32>,
    %c0_43 = arith.constant 0 : index
    %c0_44 = arith.constant 0 : index
    %86 = vector.load %arg17[%c0_43, %c0_44] : memref<8x32xf32, #tpu.memory_space<vmem>>, vector<8x32xf32>
    tpu.vector_store %arg17[%c0_43, %c0_44], %54 {strides = array<i32>} : memref<8x32xf32, #tpu.memory_space<vmem>>, vector<8x32xf32>,
    %c0_45 = arith.constant 0 : index
    %c0_46 = arith.constant 0 : index
    %87 = vector.load %arg18[%c0_45, %c0_46] : memref<8x32xf32, #tpu.memory_space<vmem>>, vector<8x32xf32>
    tpu.vector_store %arg18[%c0_45, %c0_46], %84 {strides = array<i32>} : memref<8x32xf32, #tpu.memory_space<vmem>>, vector<8x32xf32>,
    %88 = tpu.concatenate %56, %54, %82, %84 in 1 : vector<8x32xf32>, vector<8x32xf32>, vector<8x32xf32>, vector<8x32xf32> -> vector<8x128xf32>
    %c0_47 = arith.constant 0 : index
    %c0_48 = arith.constant 0 : index
    %c0_49 = arith.constant 0 : index
    %89 = vector.load %arg15[%c0_47, %c0_48, %c0_49] : memref<1x8x128xf32, #tpu.memory_space<vmem>>, vector<1x8x128xf32>
    %90 = vector.shape_cast %89 : vector<1x8x128xf32> to vector<8x128xf32>
    %91 = vector.shape_cast %88 : vector<8x128xf32> to vector<1x8x128xf32>
    tpu.vector_store %arg15[%c0_47, %c0_48, %c0_49], %91 {strides = array<i32>} : memref<1x8x128xf32, #tpu.memory_space<vmem>>, vector<1x8x128xf32>,
    return
  }
  func.func @transform_0(%arg0: i32) -> (i32, i32, i32) {
    %c0_i32 = arith.constant 0 : i32
    %c0_i32_0 = arith.constant 0 : i32
    %c0_i32_1 = arith.constant 0 : i32
    return %arg0, %c0_i32, %c0_i32_0 : i32, i32, i32
  }
  func.func @transform_1(%arg0: i32) -> (i32, i32) {
    %c0_i32 = arith.constant 0 : i32
    %c0_i32_0 = arith.constant 0 : i32
    %c0_i32_1 = arith.constant 0 : i32
    return %c0_i32, %c0_i32_0 : i32, i32
  }
  func.func @transform_2(%arg0: i32) -> (i32, i32) {
    %c0_i32 = arith.constant 0 : i32
    %c0_i32_0 = arith.constant 0 : i32
    %c0_i32_1 = arith.constant 0 : i32
    return %c0_i32, %c0_i32_0 : i32, i32
  }
  func.func @transform_3(%arg0: i32) -> (i32, i32) {
    %c0_i32 = arith.constant 0 : i32
    %c0_i32_0 = arith.constant 0 : i32
    %c0_i32_1 = arith.constant 0 : i32
    return %c0_i32, %c0_i32_0 : i32, i32
  }
  func.func @transform_4(%arg0: i32) -> (i32, i32) {
    %c0_i32 = arith.constant 0 : i32
    %c0_i32_0 = arith.constant 0 : i32
    %c0_i32_1 = arith.constant 0 : i32
    return %c0_i32, %c0_i32_0 : i32, i32
  }
  func.func @transform_5(%arg0: i32) -> (i32, i32) {
    %c0_i32 = arith.constant 0 : i32
    %c0_i32_0 = arith.constant 0 : i32
    %c0_i32_1 = arith.constant 0 : i32
    return %c0_i32, %c0_i32_0 : i32, i32
  }
  func.func @transform_6(%arg0: i32) -> (i32, i32) {
    %c0_i32 = arith.constant 0 : i32
    %c0_i32_0 = arith.constant 0 : i32
    %c0_i32_1 = arith.constant 0 : i32
    return %c0_i32, %c0_i32_0 : i32, i32
  }
  func.func @transform_7(%arg0: i32) -> (i32, i32) {
    %c0_i32 = arith.constant 0 : i32
    %c0_i32_0 = arith.constant 0 : i32
    %c0_i32_1 = arith.constant 0 : i32
    return %c0_i32, %c0_i32_0 : i32, i32
  }
  func.func @transform_8(%arg0: i32) -> (i32, i32) {
    %c0_i32 = arith.constant 0 : i32
    %c0_i32_0 = arith.constant 0 : i32
    %c0_i32_1 = arith.constant 0 : i32
    return %c0_i32, %c0_i32_0 : i32, i32
  }
  func.func @transform_9(%arg0: i32) -> (i32, i32) {
    %c0_i32 = arith.constant 0 : i32
    %c0_i32_0 = arith.constant 0 : i32
    %c0_i32_1 = arith.constant 0 : i32
    return %c0_i32, %c0_i32_0 : i32, i32
  }
  func.func @transform_10(%arg0: i32) -> (i32, i32) {
    %c0_i32 = arith.constant 0 : i32
    %c0_i32_0 = arith.constant 0 : i32
    %c0_i32_1 = arith.constant 0 : i32
    return %c0_i32, %c0_i32_0 : i32, i32
  }
  func.func @transform_11(%arg0: i32) -> (i32, i32) {
    %c0_i32 = arith.constant 0 : i32
    %c0_i32_0 = arith.constant 0 : i32
    %c0_i32_1 = arith.constant 0 : i32
    return %c0_i32, %c0_i32_0 : i32, i32
  }
  func.func @transform_12(%arg0: i32) -> (i32, i32) {
    %c0_i32 = arith.constant 0 : i32
    %c0_i32_0 = arith.constant 0 : i32
    %c0_i32_1 = arith.constant 0 : i32
    return %c0_i32, %c0_i32_0 : i32, i32
  }
  func.func @transform_13(%arg0: i32) -> (i32, i32) {
    %c0_i32 = arith.constant 0 : i32
    %c0_i32_0 = arith.constant 0 : i32
    %c0_i32_1 = arith.constant 0 : i32
    return %c0_i32, %c0_i32_0 : i32, i32
  }
  func.func @transform_14(%arg0: i32) -> (i32, i32, i32) {
    %c0_i32 = arith.constant 0 : i32
    %c0_i32_0 = arith.constant 0 : i32
    %c0_i32_1 = arith.constant 0 : i32
    return %arg0, %c0_i32, %c0_i32_0 : i32, i32, i32
  }
}

</mosaic_0001>

<bundles_post_ra>
// kernel: tpu_custom_call.1
= control target key start
LH: loop header
LB: loop body
LE: loop exit
PB: predicated region body
PF: predicated region fallthrough
CT: control target
= control target key end

     0   :  { %s2292_s0 = inlined_call_operand.hbm [shape: f32[8,8,16], index: 0, kind: input, shape index: {}]   ;;  %s2293_s1 = inlined_call_operand.hbm [shape: f32[8,32], index: 1, kind: input, shape index: {}]   ;;  %s2294_s2 = inlined_call_operand.hbm [shape: f32[8,32], index: 2, kind: input, shape index: {}]   ;;  %s2295_s3 = inlined_call_operand.vmem [shape: f32[8,32], index: 3, kind: input, shape index: {}]   ;;  %s2296_s4 = inlined_call_operand.hbm [shape: bf16[48,64], index: 4, kind: input, shape index: {}]   ;;  %s2297_s5 = inlined_call_operand.vmem [shape: f32[1,64], index: 5, kind: input, shape index: {}]   ;;  %s2298_s6 = inlined_call_operand.hbm [shape: bf16[64,64], index: 6, kind: input, shape index: {}]   ;;  %s2299_s7 = inlined_call_operand.vmem [shape: f32[1,64], index: 7, kind: input, shape index: {}]   ;;  %s2300_s8 = inlined_call_operand.hbm [shape: bf16[96,128], index: 8, kind: input, shape index: {}]   ;;  %s2301_s9 = inlined_call_operand.vmem [shape: f32[1,128], index: 9, kind: input, shape index: {}]   ;;  %s2302_s10 = inlined_call_operand.hbm [shape: bf16[32,64], index: 10, kind: input, shape index: {}]   ;;  %s2303_s11 = inlined_call_operand.vmem [shape: f32[1,64], index: 11, kind: input, shape index: {}]   ;;  %s2304_s12 = inlined_call_operand.vmem [shape: bf16[64,64], index: 12, kind: input, shape index: {}]   ;;  %s2305_s13 = inlined_call_operand.vmem [shape: f32[1,64], index: 13, kind: input, shape index: {}]   ;;  %s2306_s14 = inlined_call_operand.hbm [shape: f32[8,8,128], index: 14, kind: output, shape index: {}]  }
   0x1   :  { %2312 = sst [smem:[#allocation23_spill]] %s2293_s1 }
   0x2   :  { %2313 = sst [smem:[#allocation24_spill]] %s2296_s4 }
   0x3   :  { %2314 = sst [smem:[#allocation25_spill]] %s2301_s9 }
   0x4   :  { %2315 = sst [smem:[#allocation26_spill]] %s2303_s11 }
   0x5   :  { %2316 = sst [smem:[#allocation27_spill]] %s2304_s12 }
   0x6   :  { %2317 = sst [smem:[#allocation28_spill]] %s2305_s13 }
   0x7   :  { %2318 = sst [smem:[#allocation29_spill]] %s2306_s14 }
   0x8   :  { %19 = vsyncpa [#allocation6], 0 }
   0x9   :  { %21 = vsyncpa [#allocation6 + $0x1], 0 }
   0xa   :  { %22 = vsyncpa [#allocation9], 0 }
   0xb   :  { %23 = vsyncpa [#allocation12], 0 }
   0xc   :  { %24 = vsyncpa [#allocation15], 0 }
   0xd   :  { %25 = vsyncpa [#allocation7], 0 }
   0xe   :  { %27 = vsyncpa [#allocation7 + $0x1], 0  ;;  %s1873_s29 = smov 0   ;;  %s1875_s30 = smov 0  }
   0xf   :  { %s1877_s15 = smov 0   ;;  %s1879_s16 = smov 0  }
  0x10 LB: > { %s1782_s17 = smov [#allocation8]   ;;  %s1894_s19 = sadd.s32 4294967295, %s1780_s16   ;;  %s1780_s16 = sphi %s1879_s16, %s2348_s16   ;;  %s1776_s15 = sphi %s1877_s15, %s2347_s15   ;;  %s1772_s30 = sphi %s1875_s30, %s2346_s30   ;;  %s1768_s29 = sphi %s1873_s29, %s2345_s29  }
  0x11   : > { %s376_s18 = sshll.u32 %s1782_s17, 4  ;;  %p1220_p0 = scmp.ge.s32.totalorder %s1780_s16, 1  ;;  %s377_s18 = int_to_ptr.vmem [resolvable:$true] %s376_s18 }
  0x12   : > { %p2308_p1 = scmp.eq.s32.totalorder %s1894_s19, 0  ;;  %p363_p2 = scmp.lt.s32.totalorder %s1780_s16, 9 }
  0x13   : > { %s1783_s21 = smov [#allocation11]   ;;  %s1784_s24 = smov [#allocation14]  }
  0x14   : > { %p1900_p4 = pnand %p1220_p0, %p363_p2  ;;  %s400_s22 = sshll.u32 %s1783_s21, 4  ;;  %s1906_s22 = int_to_ptr.vmem [resolvable:$true] %s400_s22 }
  0x15   : > { %s432_s25 = sshll.u32 %s1784_s24, 4  ;;  %s2321_s1 = sld [smem:[#allocation23_spill]]  ;;  %s1914_s25 = int_to_ptr.vmem [resolvable:$true] %s432_s25 }
  0x16   : > { %s2319_s20 = scalar_select %p1900_p4, 1, 0 }
  0x17   : > { %p1384_p5 = pneg %p1900_p4 }
  0x19   : > { %p1910_p6 = pnand %p1384_p5, %p2308_p1 }
  0x1b   : > { %s1504_s28 = scalar_lea.hbm %s2321_s1, 128  ;;  %p1924_p8 = pneg %p1910_p6 }
  0x1c   : > { %p1505_p7 = scmp.ne.s32.totalorder %s2321_s1, %s1504_s28  ;;  %p1511_p11 = scmp.lt.u32.totalorder %s1504_s28, %s2321_s1 }
  0x1e   : > { %p1507_p9 = pnand %p1924_p8, %p1505_p7 }
  0x20   : > { %p1508_p10 = pneg %p1507_p9 }
  0x22   : > { %p1513_p12 = pnand %p1511_p11, %p1508_p10 }
  0x24   : > { %1516 = shalt.err (!%p1513_p12)
}
  0x25   : > { %s1517_s26 = scalar_lea.vmem %s377_s18, 128  ;;  %p1525_p5 = scmp.lt.s32.totalorder %s377_s18, %s377_s18 }
  0x26   : > { %p1518_p13 = scmp.ne.s32.totalorder %s377_s18, %s1517_s26  ;;  %p1526_p3 = scmp.lt.s32.totalorder %s1517_s26, %s1517_s26 }
  0x28   : > { %p1520_p0 = pnand %p1518_p13, %p1924_p8  ;;  %p1527_p1 = por %p1526_p3, %p1525_p5 }
  0x2a   : > { %p1521_p2 = pneg %p1520_p0 }
  0x2c   : > { %p1528_p4 = pnand %p1527_p1, %p1521_p2 }
  0x2e   : > { %1531 = shalt.err (!%p1528_p4)
}
  0x2f   : > { %1387 = dma.hbm_to_vmem [thread:$0]  (!%p1910_p6), %s2321_s1, 128, %s377_s18, [#allocation9]  }
  0x30   : > { %s2323_s4 = sld [smem:[#allocation24_spill]] }
  0x36   : > { %s1532_s17 = scalar_lea.hbm %s2323_s4, 384 }
  0x37   : > { %p1533_p7 = scmp.ne.s32.totalorder %s2323_s4, %s1532_s17  ;;  %p1539_p1 = scmp.lt.u32.totalorder %s1532_s17, %s2323_s4 }
  0x39   : > { %p1535_p9 = pnand %p1533_p7, %p1924_p8 }
  0x3b   : > { %p1536_p3 = pneg %p1535_p9 }
  0x3d   : > { %p1541_p4 = pnand %p1539_p1, %p1536_p3 }
  0x3f   : > { %1544 = shalt.err (!%p1541_p4)
}
  0x40   : > { %s1545_s18 = scalar_lea.vmem %s1906_s22, 384  ;;  %p1553_p13 = scmp.lt.s32.totalorder %s1906_s22, %s1906_s22 }
  0x41   : > { %p1546_p10 = scmp.ne.s32.totalorder %s1906_s22, %s1545_s18  ;;  %p1554_p0 = scmp.lt.s32.totalorder %s1545_s18, %s1545_s18 }
  0x43   : > { %p1548_p11 = pnand %p1546_p10, %p1924_p8  ;;  %p1555_p2 = por %p1554_p0, %p1553_p13 }
  0x45   : > { %p1549_p12 = pneg %p1548_p11 }
  0x47   : > { %p1556_p5 = pnand %p1555_p2, %p1549_p12 }
  0x49   : > { %1559 = shalt.err (!%p1556_p5)
}
  0x4a   : > { %s1785_s11 = smov 64   ;;  %s1786_s12 = smov 4  }
  0x4b   : > { %1393 = dma.hbm_to_vmem [thread:$0]  (!%p1910_p6), %s2323_s4, 384, %s1906_s22, [#allocation12], %s1785_s11, %s1785_s11, %s1786_s12  }
  0x4c   : > { %s1560_s17 = scalar_lea.hbm %s2300_s8, 768 }
  0x4d   : > { %p1561_p7 = scmp.ne.s32.totalorder %s2300_s8, %s1560_s17  ;;  %p1567_p1 = scmp.lt.u32.totalorder %s1560_s17, %s2300_s8 }
  0x4f   : > { %p1563_p9 = pnand %p1561_p7, %p1924_p8 }
  0x51   : > { %p1564_p3 = pneg %p1563_p9 }
  0x53   : > { %p1569_p4 = pnand %p1567_p1, %p1564_p3 }
  0x55   : > { %1572 = shalt.err (!%p1569_p4)
}
  0x56   : > { %s1573_s22 = scalar_lea.vmem %s1914_s25, 768  ;;  %p1581_p13 = scmp.lt.s32.totalorder %s1914_s25, %s1914_s25 }
  0x57   : > { %p1574_p10 = scmp.ne.s32.totalorder %s1914_s25, %s1573_s22  ;;  %p1582_p0 = scmp.lt.s32.totalorder %s1573_s22, %s1573_s22 }
  0x59   : > { %p1576_p11 = pnand %p1574_p10, %p1924_p8  ;;  %p1583_p2 = por %p1582_p0, %p1581_p13 }
  0x5b   : > { %p1577_p12 = pneg %p1576_p11 }
  0x5d   : > { %p1584_p5 = pnand %p1583_p2, %p1577_p12 }
  0x5f   : > { %1587 = shalt.err (!%p1584_p5)
}
  0x60   : > { %1399 = dma.hbm_to_vmem [thread:$0]  (!%p1910_p6), %s2300_s8, 768, %s1914_s25, [#allocation15], %s1785_s11, %s1785_s11, %s1786_s12  }
  0x61   : > { %s1787_s27 = smov [#allocation10]   ;;  %s1788_s28 = smov [#allocation13]  }
  0x62   : > { %s387_s13 = sshll.u32 %s1787_s27, 4  ;;  %s416_s17 = sshll.u32 %s1788_s28, 4  ;;  %s388_s13 = int_to_ptr.vmem [resolvable:$true] %s387_s13  ;;  %s417_s17 = int_to_ptr.vmem [resolvable:$true] %s416_s17 }
  0x63   : > { %s1588_s18 = scalar_lea.hbm %s2294_s2, 128 }
  0x64   : > { %p1589_p7 = scmp.ne.s32.totalorder %s2294_s2, %s1588_s18  ;;  %p1595_p1 = scmp.lt.u32.totalorder %s1588_s18, %s2294_s2 }
  0x66   : > { %p1591_p9 = pnand %p1589_p7, %p1924_p8 }
  0x68   : > { %p1592_p3 = pneg %p1591_p9 }
  0x6a   : > { %p1597_p4 = pnand %p1595_p1, %p1592_p3 }
  0x6c   : > { %1600 = shalt.err (!%p1597_p4)
}
  0x6d   : > { %s1601_s25 = scalar_lea.vmem %s388_s13, 128  ;;  %p1609_p13 = scmp.lt.s32.totalorder %s388_s13, %s388_s13 }
  0x6e   : > { %p1602_p10 = scmp.ne.s32.totalorder %s388_s13, %s1601_s25  ;;  %p1610_p0 = scmp.lt.s32.totalorder %s1601_s25, %s1601_s25 }
  0x70   : > { %p1604_p11 = pnand %p1602_p10, %p1924_p8  ;;  %p1611_p2 = por %p1610_p0, %p1609_p13 }
  0x72   : > { %p1605_p12 = pneg %p1604_p11 }
  0x74   : > { %p1612_p5 = pnand %p1611_p2, %p1605_p12 }
  0x76   : > { %1615 = shalt.err (!%p1612_p5)
}
  0x77   : > { %1390 = dma.hbm_to_vmem [thread:$0]  (!%p1910_p6), %s2294_s2, 128, %s388_s13, [#allocation9]  }
  0x78   : > { %s1616_s28 = scalar_lea.hbm %s2298_s6, 512 }
  0x79   : > { %p1617_p7 = scmp.ne.s32.totalorder %s2298_s6, %s1616_s28  ;;  %p1623_p1 = scmp.lt.u32.totalorder %s1616_s28, %s2298_s6 }
  0x7b   : > { %p1619_p9 = pnand %p1617_p7, %p1924_p8 }
  0x7d   : > { %p1620_p3 = pneg %p1619_p9 }
  0x7f   : > { %p1625_p4 = pnand %p1623_p1, %p1620_p3 }
  0x81   : > { %1628 = shalt.err (!%p1625_p4)
}
  0x82   : > { %s1629_s1 = scalar_lea.vmem %s417_s17, 512  ;;  %p1637_p13 = scmp.lt.s32.totalorder %s417_s17, %s417_s17 }
  0x83   : > { %p1630_p10 = scmp.ne.s32.totalorder %s417_s17, %s1629_s1  ;;  %p1638_p0 = scmp.lt.s32.totalorder %s1629_s1, %s1629_s1 }
  0x85   : > { %p1632_p11 = pnand %p1630_p10, %p1924_p8  ;;  %p1639_p2 = por %p1638_p0, %p1637_p13 }
  0x87   : > { %p1633_p12 = pneg %p1632_p11 }
  0x89   : > { %p1640_p5 = pnand %p1639_p2, %p1633_p12 }
  0x8b   : > { %1643 = shalt.err (!%p1640_p5)
}
  0x8c   : > { %1396 = dma.hbm_to_vmem [thread:$0]  (!%p1910_p6), %s2298_s6, 512, %s417_s17, [#allocation12], %s1785_s11, %s1785_s11, %s1786_s12  }
  0x8d   : > { %s1789_s4 = smov [#allocation16]   ;;  %s1644_s28 = scalar_lea.hbm %s2302_s10, 256 }
  0x8e   : > { %s448_s14 = sshll.u32 %s1789_s4, 4  ;;  %p1645_p7 = scmp.ne.s32.totalorder %s2302_s10, %s1644_s28  ;;  %s449_s14 = int_to_ptr.vmem [resolvable:$true] %s448_s14 }
  0x8f   : > { %p1651_p1 = scmp.lt.u32.totalorder %s1644_s28, %s2302_s10 }
  0x90   : > { %p1647_p9 = pnand %p1645_p7, %p1924_p8 }
  0x92   : > { %p1648_p3 = pneg %p1647_p9 }
  0x94   : > { %p1653_p4 = pnand %p1651_p1, %p1648_p3 }
  0x96   : > { %1656 = shalt.err (!%p1653_p4)
}
  0x97   : > { %s1657_s17 = scalar_lea.vmem %s449_s14, 256  ;;  %p1665_p13 = scmp.lt.s32.totalorder %s449_s14, %s449_s14 }
  0x98   : > { %p1658_p10 = scmp.ne.s32.totalorder %s449_s14, %s1657_s17  ;;  %p1666_p0 = scmp.lt.s32.totalorder %s1657_s17, %s1657_s17 }
  0x9a   : > { %p1660_p11 = pnand %p1658_p10, %p1924_p8  ;;  %p1667_p2 = por %p1666_p0, %p1665_p13 }
  0x9c   : > { %p1661_p12 = pneg %p1660_p11 }
  0x9e   : > { %p1668_p5 = pnand %p1667_p2, %p1661_p12 }
  0xa0   : > { %1671 = shalt.err (!%p1668_p5)
}
  0xa1   : > { %1402 = dma.hbm_to_vmem [thread:$0]  (!%p1910_p6), %s2302_s10, 256, %s449_s14, [#allocation15], %s1785_s11, %s1785_s11, %s1786_s12  }
  0xa2   : > { %s1219_s23 = sadd.s32 4294967294, %s1780_s16   ;;  %s2054_s21 = sadd.s32 1, %s1780_s16  }
  0xa3   : > { %s37_s25 = ssub.s32 %s1780_s16, %s2054_s21  ;;  %s40_s4 = sadd.s32 1, %s1776_s15 }
  0xa4   : > { %p38_p8 = scmp.eq.s32.totalorder %s37_s25, 0  ;;  %p47_p7 = scmp.ne.s32.totalorder %s1776_s15, %s1772_s30 }
  0xa5   : > { %p48_p9 = scmp.eq.s32.totalorder %s1780_s16, 0  ;;  %p53_p3 = scmp.ne.s32.totalorder %s1772_s30, %s1768_s29 }
  0xa6   : > { %s2065_s9 = scalar_select %p38_p8, %s1776_s15, %s40_s4  }
  0xa7   : > { %p2067_p1 = por %p48_p9, %p47_p7  ;;  %p2325_p4 = scmp.eq.s32.totalorder %s1894_s19, 0 }
  0xa8   : > { %p350_p10 = scmp.eq.s32.totalorder %s1894_s19, 7  ;;  %p356_p11 = scmp.eq.s32.totalorder %s1219_s23, 7 }
  0xa9   : > { %p2073_p6 = por %p2325_p4, %p53_p3  ;;  %p1417_p12 = scmp.lt.s32.totalorder %s1780_s16, 8 }
  0xaa   : > { %s471_s12 = sand.u32 1, %s1776_s15   ;;  %p2080_p13 = por %p350_p10, %p47_p7 }
  0xab   : > { %p2084_p0 = por %p356_p11, %p53_p3  ;;  %s1228_s24 = sshll.u32 %s471_s12, 3 }
  0xac   : > { %s2327_s14 = scalar_select %p2080_p13, 1, 0 }
  0xad   : > { %s2328_s28 = scalar_select %p2084_p0, 1, 0 }
  0xae   : > { %s1229_s26 = sshll.u32 %s1780_s16, 7  ;;  %s475_s1 = scalar_lea.vmem [#allocation5], %s1228_s24 }
  0xaf   : > { %s2092_s17 = scalar_lea.hbm %s2292_s0, %s1229_s26  ;;  %s482_s13 = sshll.u32 %s475_s1, 4  ;;  %s2094_s13 = int_to_ptr.vmem [resolvable:$true] %s482_s13 }
  0xb0   : > { %p2098_p2 = pnand %p1417_p12, %p2067_p1  ;;  %s472_s25 = scalar_lea.sflag [#allocation6], %s471_s12 }
  0xb1   : > { %s1672_s4 = scalar_lea.hbm %s2092_s17, 128  ;;  %s1677_s18 = scalar_lea.hbm %s2292_s0, 1024 }
  0xb2   : > { %p1673_p5 = scmp.ne.s32.totalorder %s2092_s17, %s1672_s4  ;;  %p1674_p8 = pneg %p2098_p2 }
  0xb3   : > { %p1678_p3 = scmp.lt.u32.totalorder %s2092_s17, %s2292_s0  ;;  %p1679_p1 = scmp.lt.u32.totalorder %s1677_s18, %s1672_s4 }
  0xb4   : > { %p1675_p7 = pnand %p1674_p8, %p1673_p5  ;;  %p1681_p10 = scmp.lt.u32.totalorder %s1672_s4, %s2092_s17 }
  0xb5   : > { %p1680_p4 = por %p1679_p1, %p1678_p3 }
  0xb6   : > { %p1676_p9 = pneg %p1675_p7 }
  0xb7   : > { %p1682_p11 = por %p1681_p10, %p1680_p4 }
  0xb9   : > { %p1683_p12 = pnand %p1682_p11, %p1676_p9 }
  0xbb   : > { %1686 = shalt.err (!%p1683_p12)
}
  0xbc   : > { %s1687_s12 = scalar_lea.vmem %s2094_s13, 128  ;;  %s1790_s1 = smov [#allocation5]  }
  0xbd   : > { %p1688_p5 = scmp.ne.s32.totalorder %s2094_s13, %s1687_s12  ;;  %s1692_s24 = sshll.u32 %s1790_s1, 4  ;;  %s1693_s24 = int_to_ptr.vmem [resolvable:$false] %s1692_s24 }
  0xbe   : > { %s1694_s26 = scalar_lea.vmem %s1693_s24, 256  ;;  %p1695_p13 = scmp.lt.s32.totalorder %s2094_s13, %s1693_s24 }
  0xbf   : > { %p1690_p7 = pnand %p1688_p5, %p1674_p8  ;;  %p1696_p3 = scmp.lt.s32.totalorder %s1694_s26, %s1687_s12 }
  0xc1   : > { %p1691_p0 = pneg %p1690_p7  ;;  %p1697_p1 = por %p1696_p3, %p1695_p13 }
  0xc3   : > { %p1698_p4 = pnand %p1697_p1, %p1691_p0 }
  0xc5   : > { %1701 = shalt.err (!%p1698_p4)
}
  0xc6   : > { %1406 = dma.hbm_to_vmem [thread:$0]  (!%p2098_p2), %s2092_s17, 128, %s2094_s13, %s472_s25  }
  0xc7   : > { %p2330_p9 = scmp.ne.s32.totalorder %s2319_s20, 0 }
  0xc8   : > { %s2130_s4 = sand.u32 (!%p2330_p9), 1, %s1772_s30  }
  0xc9   : > { %491 = sbr.rel (%p2330_p9) target bundleno = 2371 (0x943), region = 76  ;;  %s1231_s18 = sshll.u32 (!%p2330_p9), %s2130_s4, 3 }
  0xca   : > { %s494_s27 = scalar_lea.sflag (!%p2330_p9), [#allocation6], %s2130_s4  ;;  %s2134_s22 = scalar_lea.vmem (!%p2330_p9), [#allocation5], %s1231_s18 }
  0xd0   : > { %1747 = dma.done.wait (%p2073_p6), %s494_s27, 128  }
  0xd1   : > { %1749 = vsyncadd (%p2073_p6), %s494_s27, 4294967168  ;;  %p2331_p13 = scmp.eq.s32.totalorder %s1894_s19, 0 }
  0xd3   : > { %1751 = dma.done.wait (%p2331_p13), [#allocation9], 256   ;;  %p2332_p0 = pmov %p2331_p13 }
  0xd5   : > { %1753 = vsyncadd (%p2332_p0), [#allocation9], 4294967040  ;;  %p2333_p2 = pmov %p2332_p0 }
  0xd6   : > { %p2334_p8 = pmov %p2332_p0 }
  0xd7   : > { %1755 = dma.done.wait (%p2333_p2), [#allocation12], 896  }
  0xd8   : > { %1757 = vsyncadd (%p2334_p8), [#allocation12], 4294966400  ;;  %p2335_p10 = pmov %p2332_p0 }
  0xd9   : > { %p2336_p11 = pmov %p2332_p0 }
  0xda   : > { %1759 = dma.done.wait (%p2335_p10), [#allocation15], 1024  }
  0xdb   : > { %1761 = vsyncadd (%p2336_p11), [#allocation15], 4294966272  ;;  %s2152_s20 = scalar_lea.vmem [#allocation17], %s1231_s18  ;;  %p2337_p6 = scmp.ne.s32.totalorder %s1894_s19, 0 }
  0xdc   : > { %v571_v0 = vld [vmem:[#allocation8] sm:$0xff] (!%p2337_p6)  ;;  %vm572_vm0 = vcmask (!%p2337_p6), 261120   ;;  %v574_v1 = vld [vmem:[#allocation10] sm:$0xff] (!%p2337_p6)  ;;  %v576_v2 = vld [vmem:[%s2295_s3] sm:$0xff] (!%p2337_p6) }
  0xdd   : > { %570 = sbr.rel (%p2337_p6) target bundleno = 228 (0xe4), region = 108  ;;  %573 = vst.msk [vmem:[#allocation2] sm:$0xff] (!%p2337_p6), %vm572_vm0, %v571_v0  ;;  %575 = vst.msk [vmem:[#allocation3] sm:$0xff] (!%p2337_p6), %vm572_vm0, %v574_v1 }
  0xde   : > { %577 = vst.msk [vmem:[#allocation4] sm:$0xff] (!%p2337_p6), %vm572_vm0, %v576_v2 }
  0xe4 PF: > { %v1471_v4 = vld [vmem:[#allocation11] sm:$0xff]   ;;  %s1791_s13 = smov 16   ;;  %v1792_v5 = vmov 0.0   ;;  %v1472_v6 = vld [vmem:[#allocation11 + $0x8] sm:$0xff]   ;;  %vm1793_vm1 = vmmov 0   ;;  %v1474_v7 = vld [vmem:[#allocation13] sm:$0xff]  }
  0xe5   : > { %v581_v3 = vld [vmem:[#allocation4] sm:$0xff]  ;;  %1298 = vmatprep.subr.bf16.mxu0 %v1792_v5  ;;  %1308 = vmatprep.subr.bf16.mxu1 %v1792_v5  ;;  %v1473_v8 = vld [vmem:[#allocation11 + $0x10] sm:$0xff]   ;;  %v1475_v9 = vld [vmem:[#allocation13 + $0x8] sm:$0xff]   ;;  %vm586_vm2 = vcmask 130048   ;;  %vm620_vm3 = vcmask 392192   ;;  %s1794_s23 = smov 64  }
  0xe6   : > { %583 = vrot.lane.b32.xlu0 %v581_v3, %s1791_s13  ;;  %1299 = vmatpush3.bf16.msra.mxu0 %v1471_v4  ;;  %v578_v10 = vld [vmem:[%s2134_s22] sm:$0xff]  ;;  %v1477_v15 = vld [vmem:[#allocation13 + $0x18] sm:$0xff]   ;;  %v1478_v17 = vld [vmem:[#allocation14] sm:$0xff]   ;;  %vm705_vm4 = vcmask 523264   ;;  %vm811_vm5 = vcmask 785408   ;;  %s2338_s27 = sld [smem:[#allocation25_spill]] }
  0xe7   : > { %1300 = vmatprep.subr.bf16.mxu0 %v1792_v5  ;;  %1304 = vmatprep.mubr.msk.bf16.mxu0 %vm1793_vm1, %v1792_v5  ;;  %v1476_v14 = vld [vmem:[#allocation13 + $0x10] sm:$0xff]   ;;  %v1479_v18 = vld [vmem:[#allocation14 + $0x8] sm:$0xff]   ;;  %v1481_v20 = vld [vmem:[#allocation14 + $0x18] sm:$0xff]   ;;  %s1795_s22 = smov 32   ;;  %vm910_vm6 = vcmask 261120   ;;  %s2339_s13 = sld [smem:[#allocation27_spill]] }
  0xe8   : > { %1316 = vmatprep.mubr.msk.bf16.mxu1 %vm1793_vm1, %v1792_v5  ;;  %1309 = vmatpush3.bf16.msra.mxu1 %v1474_v7  ;;  %v579_v16 = vld [vmem:[#allocation2] sm:$0xff]  ;;  %v1482_v29 = vld [vmem:[#allocation14 + $0x20] sm:$0xff]   ;;  %v1483_v30 = vld [vmem:[#allocation14 + $0x28] sm:$0xff]   ;;  %s2340_s17 = sld [smem:[#allocation26_spill]]  ;;  %s2341_s1 = sld [smem:[#allocation28_spill]] }
  0xe9   : > { %1310 = vmatprep.subr.bf16.mxu1 %v1792_v5  ;;  %v1480_v19 = vld [vmem:[#allocation14 + $0x10] sm:$0xff]   ;;  %v580_v48 = vld [vmem:[#allocation3] sm:$0xff]  ;;  %s1796_s24 = smov 96   ;;  %s1092_s26 = sshll.u32 %s2152_s20, 4  ;;  %s2248_s26 = int_to_ptr.vmem [resolvable:$true] %s1092_s26 }
  0xea   : > { %1301 = vmatpush3.bf16.msra.mxu0 %v1472_v6  ;;  %751 = vrot.lane.b32.xlu0 %v579_v16, %s1794_s23  ;;  %v1240_v21 = vld [vmem:[%s2297_s5] ss:$0 sm:$0xff]  ;;  %v1485_v60 = vld [vmem:[#allocation16 + $0x8] sm:$0xff]   ;;  %s2342_s11 = sld [smem:[#allocation29_spill]]  ;;  %p2343_p5 = scmp.ne.s32.totalorder %s2327_s14, 0 }
  0xeb   : > { %1302 = vmatprep.subr.bf16.mxu0 %v1792_v5  ;;  %v1245_v31 = vld [vmem:[%s2299_s7] ss:$0 sm:$0xff]  ;;  %s1797_s25 = smov [#allocation17]  }
  0xec   : > { %1311 = vmatpush3.bf16.msra.mxu1 %v1475_v9  ;;  %v1251_v41 = vld [vmem:[%s2338_s27] ss:$0 sm:$0xff]  ;;  %s1706_s12 = sshll.u32 %s1797_s25, 4  ;;  %s1707_s12 = int_to_ptr.vmem [resolvable:$false] %s1706_s12 }
  0xed   : > { %1312 = vmatprep.subr.bf16.mxu1 %v1792_v5  ;;  %v1484_v59 = vld [vmem:[#allocation16] sm:$0xff]   ;;  %v1487_v3 = vld [vmem:[%s2339_s13 + $0x8] sm:$0xff]   ;;  %v1488_v4 = vld [vmem:[%s2339_s13 + $0x10] sm:$0xff]   ;;  %p1709_p1 = scmp.lt.s32.totalorder %s2248_s26, %s1707_s12 }
  0xee   : > { %1303 = vmatpush3.bf16.msra.mxu0 %v1473_v8  ;;  %v1486_v1 = vld [vmem:[%s2339_s13] sm:$0xff]   ;;  %v1489_v6 = vld [vmem:[%s2339_s13 + $0x18] sm:$0xff]  }
  0xef   : > { %1320 = vmatprep.subr.bf16.mxu0 %v1792_v5  ;;  %v1260_v7 = vld [vmem:[%s2340_s17] ss:$0 sm:$0xff] }
  0xf0   : > { %1313 = vmatpush3.bf16.msra.mxu1 %v1476_v14 }
  0xf1   : > { %1314 = vmatprep.subr.bf16.mxu1 %v1792_v5 }
  0xf4   : > { %1315 = vmatpush3.bf16.msra.mxu1 %v1477_v15 }
  0xf5   : > { %1336 = vmatprep.subr.bf16.mxu1 %v1792_v5 }
 0x158   : > { %v584_v11 = vpop.permute.xlu0 %583 }
 0x159   : > { %v587_v12 = vsel %vm586_vm2, %v578_v10, %v584_v11 }
 0x15a   : > { %v588_v13 = vpack.c.bf16 %v587_v12, %v587_v12 }
 0x15c   : > { %1305 = vmatmul.mubr.msk.bf16.vlgmr.msra.gmra.mrb[0].mxu0 %vm620_vm3, %v588_v13  ;;  %v752_v36 = vpop.permute.xlu0 %751 }
 0x15d   : > { %1332 = vmatprep.mubr.msk.bf16.mxu0 %vm1793_vm1, %v1792_v5  ;;  %1321 = vmatpush3.bf16.msra.mxu0 %v1478_v17 }
 0x15e   : > { %1322 = vmatprep.subr.bf16.mxu0 %v1792_v5 }
 0x161   : > { %1323 = vmatpush3.bf16.msra.mxu0 %v1479_v18 }
 0x162   : > { %1324 = vmatprep.subr.bf16.mxu0 %v1792_v5 }
 0x165   : > { %1325 = vmatpush3.bf16.msra.mxu0 %v1480_v19 }
 0x166   : > { %1326 = vmatprep.subr.bf16.mxu0 %v1792_v5 }
 0x169   : > { %1327 = vmatpush3.bf16.msra.mxu0 %v1481_v20 }
 0x16a   : > { %1328 = vmatprep.subr.bf16.mxu0 %v1792_v5 }
 0x16d   : > { %1329 = vmatpush3.bf16.msra.mxu0 %v1482_v29 }
 0x16e   : > { %1330 = vmatprep.subr.bf16.mxu0 %v1792_v5 }
 0x171   : > { %1331 = vmatpush3.bf16.msra.mxu0 %v1483_v30 }
 0x22f   : > { %v658_v22 = vpop.f32.mrb[0].mxu0 }
 0x230   : > { %v659_v23 = vadd.f32 %v1240_v21, %v658_v22  ;;  %v1306_v24 = vpop.f32.mrb[1].mxu0 }
 0x231   : > { %v661_v25 = vpop.f32.mrb[2].mxu0 }
 0x232   : > { %v664_v26 = vmax.f32 %v659_v23, 0.0  ;;  %v1307_v27 = vpop.f32.mrb[3].mxu0 }
 0x234   : > { %v665_v28 = vpack.c.bf16 %v664_v26, %v664_v26 }
 0x236   : > { %1317 = vmatmul.mubr.msk.bf16.vlgmr.msra.gmra.mrb[0].mxu1 %vm705_vm4, %v665_v28 }
 0x237   : > { %1340 = vmatprep.mubr.msk.bf16.mxu1 %vm1793_vm1, %v1792_v5  ;;  %1337 = vmatpush3.bf16.msra.mxu1 %v1484_v59 }
 0x238   : > { %1338 = vmatprep.subr.bf16.mxu1 %v1792_v5 }
 0x23b   : > { %1339 = vmatpush3.bf16.msra.mxu1 %v1485_v60 }
 0x23c   : > { %1344 = vmatprep.subr.bf16.mxu1 %v1792_v5 }
 0x309   : > { %v743_v32 = vpop.f32.mrb[0].mxu1 }
 0x30a   : > { %v744_v33 = vadd.f32 %v1245_v31, %v743_v32  ;;  %v1318_v34 = vpop.f32.mrb[1].mxu1 }
 0x30b   : > { %v746_v35 = vpop.f32.mrb[2].mxu1 }
 0x30c   : > { %v749_v37 = vmax.f32 %v744_v33, 0.0  ;;  %v1319_v38 = vpop.f32.mrb[3].mxu1 }
 0x30e   : > { %v754_v39 = vsel %vm705_vm4, %v749_v37, %v752_v36 }
 0x30f   : > { %v755_v40 = vpack.c.bf16 %v754_v39, %v754_v39 }
 0x311   : > { %1333 = vmatmul.mubr.msk.bf16.vlgmr.msra.gmra.mrb[4].mxu0 %vm811_vm5, %v755_v40 }
 0x3e4   : > { %v849_v42 = vpop.f32.mrb[4].mxu0 }
 0x3e5   : > { %v850_v43 = vadd.f32 %v1251_v41, %v849_v42  ;;  %v1334_v44 = vpop.f32.mrb[5].mxu0 }
 0x3e6   : > { %v852_v45 = vpop.f32.mrb[6].mxu0 }
 0x3e7   : > { %1490 = vtanh.f32 %v850_v43  ;;  %v1335_v46 = vpop.f32.mrb[7].mxu0  ;;  %v1259_v49 = vmul.f32 -1.442695, %v850_v43 }
 0x3e9   : > { %1492 = vpow2.f32 %v1259_v49 }
 0x3f1   : > { %v1491_v47 = vpop.eup %1490 }
 0x3f2   : > { %868 = vrot.lane.b32.xlu1 %v1491_v47, %s1794_s23 }
 0x3f3   : > { %v1493_v50 = vpop.eup %1492 }
 0x3f4   : > { %v858_v51 = vadd.f32 1.0, %v1493_v50 }
 0x3f6   : > { %863 = vrot.lane.b32.xlu1 %v580_v48, %s1795_s22  ;;  %1494 = vrcp.f32 %v858_v51 }
 0x400   : > { %v1495_v52 = vpop.eup %1494 }
 0x464   : > { %v869_v53 = vpop.permute.xlu1 %868 }
 0x465   : > { %v871_v54 = vmul.f32 %v1495_v52, %v869_v53 }
 0x467   : > { %873 = vrot.lane.b32.xlu0 %v871_v54, %s1795_s22 }
 0x468   : > { %v864_v55 = vpop.permute.xlu1 %863 }
 0x469   : > { %v866_v56 = vmul.f32 %v1495_v52, %v864_v55 }
 0x4d9   : > { %v874_v57 = vpop.permute.xlu0 %873 }
 0x4da   : > { %v2198_v58 = vadd.f32 %v874_v57, %v866_v56 }
 0x4dc   : > { %1496 = vtanh.f32 %v2198_v58 }
 0x4e6   : > { %v1497_v61 = vpop.eup %1496 }
 0x4e7   : > { %879 = vrot.lane.b32.xlu1 %v1497_v61, %s1794_s23 }
 0x559   : > { %v880_v62 = vpop.permute.xlu1 %879 }
 0x55a   : > { %v882_v63 = vmul.f32 %v1495_v52, %v880_v62 }
 0x55c   : > { %v883_v0 = vpack.c.bf16 %v882_v63, %v882_v63 }
 0x55e   : > { %896 = vrot.lane.b32.xlu0 %v883_v0, %s1795_s22 }
 0x5d0   : > { %v897_v2 = vpop.permute.xlu0 %896 }
 0x5d1   : > { %1341 = vmatmul.mubr.msk.bf16.vlgmr.msra.gmra.mrb[4].mxu1 %vm910_vm6, %v897_v2 }
 0x5d2   : > { %1345 = vmatpush3.bf16.msra.mxu1 %v1486_v1  ;;  %1352 = vmatprep.mubr.msk.bf16.mxu1 %vm1793_vm1, %v1792_v5 }
 0x5d3   : > { %1346 = vmatprep.subr.bf16.mxu1 %v1792_v5 }
 0x5d6   : > { %1347 = vmatpush3.bf16.msra.mxu1 %v1487_v3 }
 0x5d7   : > { %1348 = vmatprep.subr.bf16.mxu1 %v1792_v5 }
 0x5da   : > { %1349 = vmatpush3.bf16.msra.mxu1 %v1488_v4 }
 0x5db   : > { %1350 = vmatprep.subr.bf16.mxu1 %v1792_v5  ;;  %v1264_v5 = vld [vmem:[%s2341_s1] ss:$0 sm:$0xff]  ;;  %s1708_s1 = scalar_lea.vmem %s1707_s12, 256 }
 0x5de   : > { %1351 = vmatpush3.bf16.msra.mxu1 %v1489_v6 }
 0x6a4   : > { %v948_v8 = vpop.f32.mrb[4].mxu1 }
 0x6a5   : > { %v949_v9 = vadd.f32 %v1260_v7, %v948_v8  ;;  %v1342_v10 = vpop.f32.mrb[5].mxu1 }
 0x6a6   : > { %v951_v11 = vpop.f32.mrb[6].mxu1 }
 0x6a7   : > { %v954_v12 = vmax.f32 %v949_v9, 0.0  ;;  %v1343_v13 = vpop.f32.mrb[7].mxu1 }
 0x6a9   : > { %v955_v14 = vpack.c.bf16 %v954_v12, %v954_v12 }
 0x6ab   : > { %1353 = vmatmul.mubr.msk.bf16.vlgmr.msra.gmra.mrb[8].mxu1 %vm705_vm4, %v955_v14 }
 0x77e   : > { %v1032_v15 = vpop.f32.mrb[8].mxu1 }
 0x77f   : > { %v1033_v16 = vadd.f32 %v1264_v5, %v1032_v15  ;;  %v1354_v17 = vpop.f32.mrb[9].mxu1 }
 0x780   : > { %v1035_v18 = vpop.f32.mrb[10].mxu1 }
 0x781   : > { %v1355_v19 = vpop.f32.mrb[11].mxu1  ;;  %v1038_v20 = vsel %vm910_vm6, %v1033_v16, -inf  ;;  %1498 = vtanh.f32 %v1033_v16 }
 0x782   : > { %1039 = vmax.xlane.f32.xlu1 %v1038_v20 }
 0x78b   : > { %v1499_v21 = vpop.eup %1498 }
 0x793   : > { %1071 = vrot.lane.b32.xlu1 %v1499_v21, %s1794_s23 }
 0x80f   : > { %v1040_v22 = vpop.xlane.xlu1 %1039 }
 0x810   : > { %v1041_v23 = vsub.f32 %v1033_v16, %v1040_v22 }
 0x812   : > { %v1042_v24 = vmul.f32 1.442695, %v1041_v23 }
 0x813   : > { %v1072_v34 = vpop.permute.xlu1 %1071 }
 0x814   : > { %1500 = vpow2.f32 %v1042_v24 }
 0x81e   : > { %v1501_v25 = vpop.eup %1500 }
 0x81f   : > { %v1044_v26 = vsel %vm910_vm6, %v1501_v25, 0.0 }
 0x820   : > { %1045 = vadd.xlane.f32.xlu0 %v1044_v26 }
 0x836   : > { %1053 = vrot.lane.b32.xlu0 %v882_v63, %s1795_s22  ;;  %s1271_s22 = sshll.u32 %s1894_s19, 7  ;;  %s1079_s19 = scalar_lea.sflag [#allocation7], %s2130_s4 }
 0x837   : > { %s2246_s17 = scalar_lea.hbm %s2342_s11, %s1271_s22 }
 0x83a   : > { %1058 = vrot.lane.b32.xlu0 %v2198_v58, %s1796_s24 }
 0x8ad   : > { %v1046_v27 = vpop.xlane.xlu0 %1045 }
 0x8ae   : > { %1502 = vlog2.f32 %v1046_v27 }
 0x8b1   : > { %v1054_v28 = vpop.permute.xlu0 %1053 }
 0x8b2   : > { %1056 = vst.msk [vmem:[#allocation2] sm:$0xff] %vm910_vm6, %v1054_v28  ;;  %v1074_v35 = vsel %vm910_vm6, %v1054_v28, %v2198_v58 }
 0x8b5   : > { %v1059_v29 = vpop.permute.xlu0 %1058 }
 0x8b6   : > { %1061 = vst.msk [vmem:[#allocation3] sm:$0xff] %vm910_vm6, %v1059_v29 }
 0x8b8   : > { %v1503_v30 = vpop.eup %1502 }
 0x8b9   : > { %v1048_v31 = vmul.f32 0.6931472, %v1503_v30 }
 0x8bb   : > { %v1049_v32 = vadd.f32 %v1048_v31, %v1040_v22 }
 0x8bd   : > { %v1050_v33 = vsub.f32 %v1033_v16, %v1049_v32 }
 0x8bf   : > { %1068 = vrot.lane.b32.xlu1 %v1050_v33, %s1794_s23  ;;  %s1702_s23 = scalar_lea.vmem %s2248_s26, 128 }
 0x8c0   : > { %p1703_p12 = scmp.ne.s32.totalorder %s2248_s26, %s1702_s23  ;;  %p1710_p4 = scmp.lt.s32.totalorder %s1708_s1, %s1702_s23 }
 0x8c2   : > { %p1704_p7 = pnand %p1703_p12, %p2343_p5  ;;  %p1711_p9 = por %p1710_p4, %p1709_p1 }
 0x8c3   : > { %1063 = vrot.lane.b32.xlu1 %v1499_v21, %s1796_s24 }
 0x8c4   : > { %p1705_p3 = pneg %p1704_p7 }
 0x8c6   : > { %p1712_p13 = pnand %p1711_p9, %p1705_p3 }
 0x931   : > { %v1069_v36 = vpop.permute.xlu1 %1068 }
 0x932   : > { %v1075_v37 = vsel %vm705_vm4, %v1074_v35, %v1069_v36 }
 0x933   : > { %v1076_v38 = vsel %vm811_vm5, %v1075_v37, %v1072_v34 }
 0x934   : > { %1077 = vst [vmem:[%s2152_s20] sm:$0xff] %v1076_v38 }
 0x935   : > { %v1064_v39 = vpop.permute.xlu1 %1063 }
 0x936   : > { %1715 = shalt.err (!%p1712_p13)
}
 0x937   : > { %s1716_s4 = scalar_lea.hbm %s2246_s17, 128  ;;  %s1720_s22 = scalar_lea.hbm %s2342_s11, 1024 }
 0x938   : > { %p1717_p0 = scmp.ne.s32.totalorder %s2246_s17, %s1716_s4  ;;  %p1721_p10 = scmp.lt.u32.totalorder %s2246_s17, %s2342_s11 }
 0x939   : > { %p1722_p11 = scmp.lt.u32.totalorder %s1720_s22, %s1716_s4  ;;  %p1724_p12 = scmp.lt.u32.totalorder %s1716_s4, %s2246_s17 }
 0x93a   : > { %p1718_p2 = pnand %p1717_p0, %p2343_p5 }
 0x93b   : > { %p1723_p6 = por %p1722_p11, %p1721_p10 }
 0x93c   : > { %p1719_p8 = pneg %p1718_p2 }
 0x93d   : > { %p1725_p7 = por %p1724_p12, %p1723_p6 }
 0x93f   : > { %p1726_p3 = pnand %p1725_p7, %p1719_p8 }
 0x941   : > { %1729 = shalt.err (!%p1726_p3)
}
 0x942   : > { %1382 = dma.vmem_to_hbm [thread:$0]  (%p2343_p5), %s2248_s26, 128, %s2246_s17, %s1079_s19   ;;  %1066 = vst.msk [vmem:[#allocation4] sm:$0xff] %vm910_vm6, %v1064_v39 }
 0x943 PF: > { %p1424_p1 = scmp.ge.s32.totalorder %s1780_s16, 2  ;;  %s1104_s23 = sand.u32 1, %s1768_s29  }
 0x944   : > { %p2344_p4 = scmp.ne.s32.totalorder %s2328_s28, 0  ;;  %s1105_s25 = scalar_lea.sflag [#allocation7], %s1104_s23 }
 0x946   : > { %p1408_p9 = pnand %p1424_p1, %p2344_p4 }
 0x948   : > { %1763 = dma.done.wait (!%p1408_p9), %s1105_s25, 128  }
 0x949   : > { %1765 = vsyncadd (!%p1408_p9), %s1105_s25, 4294967168  ;;  %p30_p13 = scmp.ge.s32.totalorder %s2054_s21, 10   ;;  %s2345_s29 = smov %s1772_s30 }
 0x94a   : > { %s2346_s30 = smov %s1776_s15  ;;  %s2347_s15 = smov %s2065_s9 }
 0x94b   : > { %s2348_s16 = smov %s2054_s21  ;;  %32 = sbr.rel (!%p30_p13) target bundleno = 16 (0x10), region = 149 }
 0x952   :  { %1110 = vsyncpa [#allocation6], 1 }
 0x953   :  { %1112 = vsyncpa [#allocation6 + $0x1], 1 }
 0x954   :  { %1113 = vsyncpa [#allocation9], 1 }
 0x955   :  { %1114 = vsyncpa [#allocation12], 1 }
 0x956   :  { %1115 = vsyncpa [#allocation15], 1 }
 0x957   :  { %1116 = vsyncpa [#allocation7], 1 }
 0x958   :  { %1118 = vsyncpa [#allocation7 + $0x1], 1 }

</bundles_post_ra>
